<compile_context>
chip_gen: v7x
topology: tpu7x:2x2x1
jax: 0.10.0
libtpu: 0.0.40
codegen_flags: <defaults>
</compile_context>

<pallas_src>
import jax
import jax.numpy as jnp
from jax.experimental import pallas as pl
from jax.experimental.pallas import tpu as pltpu

_COMPUTE = jnp.bfloat16   # MXU operand / inter-layer activation dtype
_EPS = 1e-5               # MONAI DynUNet InstanceNorm default
_NEG_SLOPE = 0.01         # MONAI DynUNet LeakyReLU default


def _pick_vmem_limit():
    cap = 64 << 20
    try:
        info = pltpu.get_tpu_info()
        v = getattr(info, "vmem_capacity_bytes", None)
        if v:
            cap = int(v)
    except Exception:
        pass
    # ~75% of physical VMEM: ~96 MiB on v5e/v6e (128 MiB), ~48 MiB on v7x (64 MiB).
    return max(32 << 20, min(100 << 20, (cap * 3) // 4))


_VMEM_LIMIT = _pick_vmem_limit()
_CPARAMS = pltpu.CompilerParams(
    dimension_semantics=("parallel",),
    vmem_limit_bytes=_VMEM_LIMIT,
)


# ----------------------------------------------------------------------------
# Layout helpers (XLA side; reshapes on contiguous dims are metadata-only)
#
# padded-flat PF(C,H,W): (N, C, (H+2)*(W+2) + 2); element [n,c, 1+u*(W+2)+v] is
# x[n,c,u-1,v-1] for interior (u,v), zero elsewhere.  Every 3x3 stride-1 tap of
# such a buffer is a contiguous lane-slice of length H*(W+2).
# rows-only R(C,H,W): (N, C, H*(W+2)); the interior rows of PF (no halo rows).
# ----------------------------------------------------------------------------
def _dense_to_pf(x, dtype):
    n, c, h, w = x.shape
    xp = jnp.pad(x.astype(dtype), ((0, 0), (0, 0), (1, 1), (1, 1)))
    return jnp.pad(xp.reshape(n, c, (h + 2) * (w + 2)), ((0, 0), (0, 0), (1, 1)))


def _pf_to_dense(x_pf, h, w):
    n, c = x_pf.shape[:2]
    hp, wp = h + 2, w + 2
    return x_pf[:, :, 1:1 + hp * wp].reshape(n, c, hp, wp)[:, :, 1:1 + h, 1:1 + w]


def _rows_to_dense(y, h, w):
    n, c = y.shape[:2]
    return y.reshape(n, c, h, w + 2)[:, :, :, 1:1 + w]


def _stride2_phases(x, hout, wout, dtype):
    """dense (N,C,H,W) -> 4 flat phase tensors for a stride-2 3x3 conv (pad=1),
    each (N, C, (hout+1)*(wout+2)+2), laid out so every tap is a contiguous
    lane-slice whose row stride matches the output's padded-width layout."""
    n, c, h, w = x.shape
    hh, wp = hout + 1, wout + 2
    xp = jnp.pad(x.astype(dtype),
                 ((0, 0), (0, 0), (1, 2 * hh - h - 1), (1, 2 * wp - w - 1)))
    phases = []
    for a in range(2):
        for b in range(2):
            ph = xp[:, :, a::2, b::2].reshape(n, c, hh * wp)
            phases.append(jnp.pad(ph, ((0, 0), (0, 0), (1, 1))))
    return phases


# ----------------------------------------------------------------------------
# Fused 3x3 conv (+ eliminated concat) + InstanceNorm + LeakyReLU (+ 1x1 head)
# One grid step per batch sample; ONE weight-stationary MXU dot per step.
# ----------------------------------------------------------------------------
def fused_conv3x3_in_lrelu(sources, gamma, beta, hout, wout, out_dtype,
                           emit_halo=True, head=None):
    """sources: list of dicts
         {"stride": 1, "pf": PF(Cin, hout, wout) array, "w": (Cout,Cin,3,3)}
         {"stride": 2, "x": dense (N,Cin,H,W),          "w": (Cout,Cin,3,3)}
       Contributions of all sources are summed (== conv over channel-concat),
       then InstanceNorm(affine, eps=1e-5, biased var) + LeakyReLU(0.01).
       Returns PF output (emit_halo=True) or rows-only output (emit_halo=False),
       plus rows-only f32 head output if head=(w_1x1 (Ch,Cout), b (Ch,))."""
    wp = wout + 2
    nw = hout * wp
    lout = (hout + 2) * wp + 2
    cout = sources[0]["w"].shape[0]
    first = sources[0]
    n_batch = (first["pf"] if first["stride"] == 1 else first["x"]).shape[0]

    arrays, in_specs, slab_plan, wblocks = [], [], [], []
    for src in sources:
        w = src["w"]
        cin = w.shape[1]
        # columns ordered (kh*3+kw)*Cin + ci to match the tap-matrix row order
        wblocks.append(jnp.transpose(w, (0, 2, 3, 1)).reshape(cout, 9 * cin))
        if src["stride"] == 1:
            pf = src["pf"]
            assert pf.shape[1] == cin and pf.shape[2] == lout, (pf.shape, lout)
            ridx = len(arrays)
            arrays.append(pf)
            in_specs.append(pl.BlockSpec((1, cin, lout), lambda n: (n, 0, 0)))
            for kh in range(3):
                for kw in range(3):
                    slab_plan.append((ridx, kh * wp + kw))
        elif src["stride"] == 2:
            # TODO(synk): build the phases in-kernel (strided loads) instead of XLA.
            phases = _stride2_phases(src["x"], hout, wout, _COMPUTE)
            lp = phases[0].shape[2]
            base = len(arrays)
            for ph in phases:
                arrays.append(ph)
                in_specs.append(pl.BlockSpec((1, cin, lp), lambda n: (n, 0, 0)))
            for kh in range(3):
                for kw in range(3):
                    slab_plan.append((base + (kh % 2) * 2 + (kw % 2),
                                      (kh // 2) * wp + (kw // 2)))
        else:
            raise ValueError("stride must be 1 or 2")
    n_src_arrays = len(arrays)

    w_all = jnp.concatenate(wblocks, axis=1).astype(_COMPUTE)   # (Cout, K)
    k_total = w_all.shape[1]

    # per-column validity mask: 1 at real pixels, 0 at the width-halo columns
    col = jnp.arange(nw, dtype=jnp.int32) % wp
    mask = ((col >= 1) & (col <= wout)).astype(jnp.float32).reshape(1, nw)

    arrays += [w_all, mask,
               gamma.reshape(cout, 1).astype(jnp.float32),
               beta.reshape(cout, 1).astype(jnp.float32)]
    in_specs += [pl.BlockSpec((cout, k_total), lambda n: (0, 0)),
                 pl.BlockSpec((1, nw), lambda n: (0, 0)),
                 pl.BlockSpec((cout, 1), lambda n: (0, 0)),
                 pl.BlockSpec((cout, 1), lambda n: (0, 0))]

    have_head = head is not None
    if have_head:
        hw, hb = head
        ch = hw.shape[0]
        arrays += [hw.astype(jnp.float32), hb.reshape(ch, 1).astype(jnp.float32)]
        in_specs += [pl.BlockSpec((ch, cout), lambda n: (0, 0)),
                     pl.BlockSpec((ch, 1), lambda n: (0, 0))]

    inv_n = 1.0 / float(hout * wout)

    def kernel(*refs):
        src_refs = refs[:n_src_arrays]
        w_ref, m_ref, g_ref, b_ref = refs[n_src_arrays:n_src_arrays + 4]
        pos = n_src_arrays + 4
        if have_head:
            hw_ref, hb_ref = refs[pos], refs[pos + 1]
            pos += 2
        o_ref = refs[pos]
        ho_ref = refs[pos + 1] if have_head else None

        # (K, HW) tap matrix: every tap is one contiguous lane-slice of a Ref.
        slabs = [src_refs[r][0, :, s:s + nw] for (r, s) in slab_plan]
        rhs = jnp.concatenate(slabs, axis=0).astype(_COMPUTE)          # (K, NW)
        acc = jnp.dot(w_ref[...], rhs, preferred_element_type=jnp.float32)

        m = m_ref[...]                                                  # (1, NW)
        mean = jnp.sum(acc * m, axis=1, keepdims=True) * inv_n
        cen = acc - mean
        var = jnp.sum(cen * cen * m, axis=1, keepdims=True) * inv_n
        y = cen * jax.lax.rsqrt(var + _EPS)
        y = y * g_ref[...] + b_ref[...]
        y = jnp.where(y >= 0.0, y, _NEG_SLOPE * y)
        y = y * m                                  # zero the width-halo columns

        if emit_halo:
            zrow = jnp.zeros((cout, wp + 1), o_ref.dtype)
            o_ref[0, :, 0:wp + 1] = zrow                                 # top halo
            o_ref[0, :, wp + 1:wp + 1 + nw] = y.astype(o_ref.dtype)     # interior
            o_ref[0, :, wp + 1 + nw:lout] = zrow                        # bottom halo
        else:
            o_ref[0, :, :] = y.astype(o_ref.dtype)

        if have_head:  # fused 1x1 deep-supervision head (f32 epilogue)
            h = jnp.dot(hw_ref[...], y, preferred_element_type=jnp.float32) + hb_ref[...]
            ho_ref[0, :, :] = h.astype(ho_ref.dtype)

    main_cols = lout if emit_halo else nw
    out_shape = [jax.ShapeDtypeStruct((n_batch, cout, main_cols), out_dtype)]
    out_specs = [pl.BlockSpec((1, cout, main_cols), lambda n: (n, 0, 0))]
    if have_head:
        out_shape.append(jax.ShapeDtypeStruct((n_batch, ch, nw), jnp.float32))
        out_specs.append(pl.BlockSpec((1, ch, nw), lambda n: (n, 0, 0)))

    return pl.pallas_call(
        kernel,
        out_shape=tuple(out_shape) if have_head else out_shape[0],
        grid=(n_batch,),
        in_specs=in_specs,
        out_specs=tuple(out_specs) if have_head else out_specs[0],
        compiler_params=_CPARAMS,
    )(*arrays)


# ----------------------------------------------------------------------------
# 2x2 stride-2 ConvTranspose (no bias) as one weight-stationary per-sample dot.
# ----------------------------------------------------------------------------
def transp_conv2x2(x_rows, wt, hl, wl, out_dtype):
    n, cin, l = x_rows.shape
    assert l == hl * (wl + 2), (x_rows.shape, hl, wl)
    cout = wt.shape[1]
    # rows ordered (co, a, b) so the XLA interleave below is reshape+transpose only
    w_mat = jnp.transpose(wt, (1, 2, 3, 0)).reshape(4 * cout, cin).astype(_COMPUTE)

    def kernel(x_ref, w_ref, o_ref):
        acc = jnp.dot(w_ref[...], x_ref[0].astype(_COMPUTE),
                      preferred_element_type=jnp.float32)
        o_ref[0, :, :] = acc.astype(o_ref.dtype)

    y = pl.pallas_call(
        kernel,
        out_shape=jax.ShapeDtypeStruct((n, 4 * cout, l), out_dtype),
        grid=(n,),
        in_specs=[pl.BlockSpec((1, cin, l), lambda i: (i, 0, 0)),
                  pl.BlockSpec((4 * cout, cin), lambda i: (0, 0))],
        out_specs=pl.BlockSpec((1, 4 * cout, l), lambda i: (i, 0, 0)),
        compiler_params=_CPARAMS,
    )(x_rows, w_mat)

    # TODO(synk): fuse this subpixel interleave (and the matmul itself) into the
    # up-block's first conv via phase-aware tap offsets; for now one XLA pass.
    y = y.reshape(n, cout, 2, 2, hl, wl + 2)[:, :, :, :, :, 1:1 + wl]
    y = jnp.transpose(y, (0, 1, 4, 2, 5, 3)).reshape(n, cout, 2 * hl, 2 * wl)
    return y


# ----------------------------------------------------------------------------
# Blocks (MONAI UnetBasicBlock / UnetUpBlock semantics)
# ----------------------------------------------------------------------------
def make_downsample_block(p, hin, win):
    hout, wout = (hin - 1) // 2 + 1, (win - 1) // 2 + 1

    def block(x_dense):                       # dense NCHW in, PF out (skip tensor)
        y = fused_conv3x3_in_lrelu([{"stride": 2, "x": x_dense, "w": p["w1"]}],
                                   p["g1"], p["b1"], hout, wout, _COMPUTE, True)
        y = fused_conv3x3_in_lrelu([{"stride": 1, "pf": y, "w": p["w2"]}],
                                   p["g2"], p["b2"], hout, wout, _COMPUTE, True)
        return y
    return block


def make_bottleneck_block(p, hin, win):
    hout, wout = (hin - 1) // 2 + 1, (win - 1) // 2 + 1

    def block(x_pf):                          # PF in, rows-only out (feeds transp conv)
        x_dense = _pf_to_dense(x_pf, hin, win)
        y = fused_conv3x3_in_lrelu([{"stride": 2, "x": x_dense, "w": p["w1"]}],
                                   p["g1"], p["b1"], hout, wout, _COMPUTE, True)
        y = fused_conv3x3_in_lrelu([{"stride": 1, "pf": y, "w": p["w2"]}],
                                   p["g2"], p["b2"], hout, wout, _COMPUTE, False)
        return y
    return block


def make_up_block(p, hl, wl):
    """UnetUpBlock: 2x2 stride-2 transp conv -> cat([up, skip], C) -> basic block.
    The concat is eliminated (two weight halves in one dot); the optional 1x1
    deep-supervision head is fused into the last conv's epilogue."""
    hout, wout = 2 * hl, 2 * wl

    def block(x_rows, skip_pf, head_params=None):
        c_up = p["wt"].shape[1]
        up_dense = transp_conv2x2(x_rows, p["wt"], hl, wl, _COMPUTE)
        up_pf = _dense_to_pf(up_dense, _COMPUTE)
        y = fused_conv3x3_in_lrelu(
            [{"stride": 1, "pf": up_pf, "w": p["w1"][:, :c_up]},
             {"stride": 1, "pf": skip_pf, "w": p["w1"][:, c_up:]}],
            p["g1"], p["b1"], hout, wout, _COMPUTE, True)
        head = None
        if head_params is not None:
            ch = head_params["w"].shape[0]
            head = (head_params["w"].reshape(ch, -1), head_params["b"])
        res = fused_conv3x3_in_lrelu(
            [{"stride": 1, "pf": y, "w": p["w2"]}],
            p["g2"], p["b2"], hout, wout, jnp.float32, False, head=head)
        if head_params is not None:
            up_rows, head_rows = res
            return (_rows_to_dense(up_rows, hout, wout),
                    _rows_to_dense(head_rows, hout, wout))
        return _rows_to_dense(res, hout, wout)
    return block


# ----------------------------------------------------------------------------
# DynUNetSkipLayer -- forward semantics copied from MONAI.
# ----------------------------------------------------------------------------
class DynUNetSkipLayer:
    """downout = downsample(x); nextout = next_layer(downout);
    upout = upsample(nextout, downout);
    if super_head and heads and index > 0: heads[index-1] = super_head(upout);
    return upout.
    The 1x1 super_head (params dict) is fused into the upsample block's last
    conv kernel -- identical math to applying it to upout afterwards."""

    def __init__(self, index, downsample, upsample, next_layer, heads=None, super_head=None):
        self.downsample = downsample
        self.next_layer = next_layer
        self.upsample = upsample
        self.super_head = super_head
        self.heads = heads
        self.index = index

    def __call__(self, x):
        downout = self.downsample(x)
        nextout = self.next_layer(downout)
        use_head = (self.super_head is not None and self.heads is not None
                    and self.index > 0)
        if use_head:
            upout, head = self.upsample(nextout, downout, self.super_head)
            # Python-list side effect kept eager (as in the PyTorch module);
            # not jit-safe -- return `head` functionally if wrapping in jax.jit.
            self.heads[self.index - 1] = head
        else:
            upout = self.upsample(nextout, downout)
        return upout


# ----------------------------------------------------------------------------
# Deterministic parameter construction + demo
# ----------------------------------------------------------------------------
def _init_conv(key, cout, cin, k):
    return jax.random.normal(key, (cout, cin, k, k), jnp.float32) * 0.1


def _init_norm(key, c):
    k1, k2 = jax.random.split(key)
    return (1.0 + 0.1 * jax.random.normal(k1, (c,), jnp.float32),
            0.1 * jax.random.normal(k2, (c,), jnp.float32))


def _init_basic_block(key, cin, cout):
    k = jax.random.split(key, 4)
    g1, b1 = _init_norm(k[1], cout)
    g2, b2 = _init_norm(k[3], cout)
    return {"w1": _init_conv(k[0], cout, cin, 3), "g1": g1, "b1": b1,
            "w2": _init_conv(k[2], cout, cout, 3), "g2": g2, "b2": b2}


if __name__ == "__main__":
    key = jax.random.PRNGKey(0)
    kx, kd, kb, kt, ku, khd = jax.random.split(key, 6)

    in_ch, down_ch, bot_ch, n_classes = 4, 8, 16, 3
    batch, height, width = 2, 16, 16

    p_down = _init_basic_block(kd, in_ch, down_ch)            # 4 -> 8, stride 2
    p_bot = _init_basic_block(kb, down_ch, bot_ch)            # 8 -> 16, stride 2
    p_up = _init_basic_block(ku, 2 * down_ch, down_ch)        # (8 up + 8 skip) -> 8
    p_up["wt"] = jax.random.normal(kt, (bot_ch, down_ch, 2, 2), jnp.float32) * 0.1
    kh1, kh2 = jax.random.split(khd)
    p_head = {"w": jax.random.normal(kh1, (n_classes, down_ch, 1, 1), jnp.float32) * 0.1,
              "b": 0.1 * jax.random.normal(kh2, (n_classes,), jnp.float32)}

    hd, wd = height // 2, width // 2      # downsample output: 8 x 8
    hb, wb = hd // 2, wd // 2             # bottleneck output: 4 x 4

    heads = [None]
    layer = DynUNetSkipLayer(
        index=1,
        downsample=make_downsample_block(p_down, height, width),
        upsample=make_up_block(p_up, hb, wb),
        next_layer=make_bottleneck_block(p_bot, hd, wd),      # bottom of the UNet
        heads=heads,
        super_head=p_head,
    )

    x = jax.random.normal(kx, (batch, in_ch, height, width), jnp.float32)  # NCHW

    upout = layer(x)
    jax.block_until_ready(upout)
    jax.block_until_ready(heads[0])

    assert upout.shape == (batch, down_ch, hd, wd), upout.shape
    assert heads[0].shape == (batch, n_classes, hd, wd), heads[0].shape
    assert upout.dtype == jnp.float32 and heads[0].dtype == jnp.float32
    assert bool(jnp.all(jnp.isfinite(upout))) and bool(jnp.all(jnp.isfinite(heads[0])))

    print("KERNEL_OK")
</pallas_src>

<mosaic_0001>
module attributes {stable_mosaic.version = 11 : i64} {
  func.func @kernel(%arg0: i32, %arg1: memref<1x4x92xbf16, #tpu.memory_space<vmem>>, %arg2: memref<1x4x92xbf16, #tpu.memory_space<vmem>>, %arg3: memref<1x4x92xbf16, #tpu.memory_space<vmem>>, %arg4: memref<1x4x92xbf16, #tpu.memory_space<vmem>>, %arg5: memref<8x36xbf16, #tpu.memory_space<vmem>>, %arg6: memref<1x80xf32, #tpu.memory_space<vmem>>, %arg7: memref<8x1xf32, #tpu.memory_space<vmem>>, %arg8: memref<8x1xf32, #tpu.memory_space<vmem>>, %arg9: memref<1x8x102xbf16, #tpu.memory_space<vmem>>) attributes {dimension_semantics = [#tpu.dimension_semantics<parallel>], iteration_bounds = array<i64: 2>, scalar_prefetch = 0 : i64, scratch_operands = 0 : i64, tpu.core_type = #tpu.core_type<tc>, window_params = [{transform_indices = @transform_0, window_bounds = array<i64: 1, 4, 92>}, {transform_indices = @transform_1, window_bounds = array<i64: 1, 4, 92>}, {transform_indices = @transform_2, window_bounds = array<i64: 1, 4, 92>}, {transform_indices = @transform_3, window_bounds = array<i64: 1, 4, 92>}, {pipeline_mode = #tpu.pipeline_mode<synchronous>, transform_indices = @transform_4, window_bounds = array<i64: 8, 36>}, {pipeline_mode = #tpu.pipeline_mode<synchronous>, transform_indices = @transform_5, window_bounds = array<i64: 1, 80>}, {pipeline_mode = #tpu.pipeline_mode<synchronous>, transform_indices = @transform_6, window_bounds = array<i64: 8, 1>}, {pipeline_mode = #tpu.pipeline_mode<synchronous>, transform_indices = @transform_7, window_bounds = array<i64: 8, 1>}, {transform_indices = @transform_8, window_bounds = array<i64: 1, 8, 102>}]} {
    %c0 = arith.constant 0 : index
    %c0_0 = arith.constant 0 : index
    %c0_1 = arith.constant 0 : index
    %0 = vector.load %arg1[%c0, %c0_0, %c0_1] : memref<1x4x92xbf16, #tpu.memory_space<vmem>>, vector<1x4x80xbf16>
    %1 = vector.shape_cast %0 : vector<1x4x80xbf16> to vector<4x80xbf16>
    %c0_2 = arith.constant 0 : index
    %c0_3 = arith.constant 0 : index
    %c0_4 = arith.constant 0 : index
    %2 = vector.load %arg2[%c0_2, %c0_3, %c0_4] : memref<1x4x92xbf16, #tpu.memory_space<vmem>>, vector<1x4x80xbf16>
    %3 = vector.shape_cast %2 : vector<1x4x80xbf16> to vector<4x80xbf16>
    %c0_5 = arith.constant 0 : index
    %c0_6 = arith.constant 0 : index
    %c1 = arith.constant 1 : index
    %4 = vector.load %arg1[%c0_5, %c0_6, %c1] : memref<1x4x92xbf16, #tpu.memory_space<vmem>>, vector<1x4x80xbf16>
    %5 = vector.shape_cast %4 : vector<1x4x80xbf16> to vector<4x80xbf16>
    %c0_7 = arith.constant 0 : index
    %c0_8 = arith.constant 0 : index
    %c0_9 = arith.constant 0 : index
    %6 = vector.load %arg3[%c0_7, %c0_8, %c0_9] : memref<1x4x92xbf16, #tpu.memory_space<vmem>>, vector<1x4x80xbf16>
    %7 = vector.shape_cast %6 : vector<1x4x80xbf16> to vector<4x80xbf16>
    %c0_10 = arith.constant 0 : index
    %c0_11 = arith.constant 0 : index
    %c0_12 = arith.constant 0 : index
    %8 = vector.load %arg4[%c0_10, %c0_11, %c0_12] : memref<1x4x92xbf16, #tpu.memory_space<vmem>>, vector<1x4x80xbf16>
    %9 = vector.shape_cast %8 : vector<1x4x80xbf16> to vector<4x80xbf16>
    %c0_13 = arith.constant 0 : index
    %c0_14 = arith.constant 0 : index
    %c1_15 = arith.constant 1 : index
    %10 = vector.load %arg3[%c0_13, %c0_14, %c1_15] : memref<1x4x92xbf16, #tpu.memory_space<vmem>>, vector<1x4x80xbf16>
    %11 = vector.shape_cast %10 : vector<1x4x80xbf16> to vector<4x80xbf16>
    %c0_16 = arith.constant 0 : index
    %c0_17 = arith.constant 0 : index
    %c10 = arith.constant 10 : index
    %12 = vector.load %arg1[%c0_16, %c0_17, %c10] : memref<1x4x92xbf16, #tpu.memory_space<vmem>>, vector<1x4x80xbf16>
    %13 = vector.shape_cast %12 : vector<1x4x80xbf16> to vector<4x80xbf16>
    %c0_18 = arith.constant 0 : index
    %c0_19 = arith.constant 0 : index
    %c10_20 = arith.constant 10 : index
    %14 = vector.load %arg2[%c0_18, %c0_19, %c10_20] : memref<1x4x92xbf16, #tpu.memory_space<vmem>>, vector<1x4x80xbf16>
    %15 = vector.shape_cast %14 : vector<1x4x80xbf16> to vector<4x80xbf16>
    %c0_21 = arith.constant 0 : index
    %c0_22 = arith.constant 0 : index
    %c11 = arith.constant 11 : index
    %16 = vector.load %arg1[%c0_21, %c0_22, %c11] : memref<1x4x92xbf16, #tpu.memory_space<vmem>>, vector<1x4x80xbf16>
    %17 = vector.shape_cast %16 : vector<1x4x80xbf16> to vector<4x80xbf16>
    %18 = tpu.concatenate %1, %3, %5, %7, %9, %11, %13, %15, %17 in 0 : vector<4x80xbf16>, vector<4x80xbf16>, vector<4x80xbf16>, vector<4x80xbf16>, vector<4x80xbf16>, vector<4x80xbf16>, vector<4x80xbf16>, vector<4x80xbf16>, vector<4x80xbf16> -> vector<36x80xbf16>
    %c0_23 = arith.constant 0 : index
    %c0_24 = arith.constant 0 : index
    %19 = vector.load %arg5[%c0_23, %c0_24] : memref<8x36xbf16, #tpu.memory_space<vmem>>, vector<8x36xbf16>
    %cst = arith.constant dense<0.000000e+00> : vector<8x80xf32>
    %20 = tpu.matmul %19, %18, %cst {dimension_numbers = #tpu.dot_dimension_numbers<[1], [0], [0], [1], [0, 0, 1, 1], [], []>} : vector<8x36xbf16>, vector<36x80xbf16>, vector<8x80xf32> -> vector<8x80xf32>
    %c0_25 = arith.constant 0 : index
    %c0_26 = arith.constant 0 : index
    %21 = vector.load %arg6[%c0_25, %c0_26] : memref<1x80xf32, #tpu.memory_space<vmem>>, vector<1x80xf32>
    %22 = vector.broadcast %21 : vector<1x80xf32> to vector<8x80xf32>
    %23 = arith.mulf %20, %22 : vector<8x80xf32>
    %cst_27 = arith.constant dense<0.000000e+00> : vector<8xf32>
    %24 = vector.multi_reduction <add>, %23, %cst_27 [1] : vector<8x80xf32> to vector<8xf32>
    %25 = vector.shape_cast %24 : vector<8xf32> to vector<8x1xf32>
    %cst_28 = arith.constant 1.562500e-02 : f32
    %26 = vector.broadcast %cst_28 : f32 to vector<8x1xf32>
    %27 = arith.mulf %25, %26 : vector<8x1xf32>
    %28 = vector.broadcast %27 : vector<8x1xf32> to vector<8x80xf32>
    %29 = arith.subf %20, %28 : vector<8x80xf32>
    %30 = arith.mulf %29, %29 : vector<8x80xf32>
    %31 = vector.broadcast %21 : vector<1x80xf32> to vector<8x80xf32>
    %32 = arith.mulf %30, %31 : vector<8x80xf32>
    %cst_29 = arith.constant dense<0.000000e+00> : vector<8xf32>
    %33 = vector.multi_reduction <add>, %32, %cst_29 [1] : vector<8x80xf32> to vector<8xf32>
    %34 = vector.shape_cast %33 : vector<8xf32> to vector<8x1xf32>
    %cst_30 = arith.constant 1.562500e-02 : f32
    %35 = vector.broadcast %cst_30 : f32 to vector<8x1xf32>
    %36 = arith.mulf %34, %35 : vector<8x1xf32>
    %cst_31 = arith.constant 9.99999974E-6 : f32
    %37 = vector.broadcast %cst_31 : f32 to vector<8x1xf32>
    %38 = arith.addf %36, %37 : vector<8x1xf32>
    %39 = math.rsqrt %38 : vector<8x1xf32>
    %40 = vector.broadcast %39 : vector<8x1xf32> to vector<8x80xf32>
    %41 = arith.mulf %29, %40 : vector<8x80xf32>
    %c0_32 = arith.constant 0 : index
    %c0_33 = arith.constant 0 : index
    %42 = vector.load %arg7[%c0_32, %c0_33] : memref<8x1xf32, #tpu.memory_space<vmem>>, vector<8x1xf32>
    %43 = vector.broadcast %42 : vector<8x1xf32> to vector<8x80xf32>
    %44 = arith.mulf %41, %43 : vector<8x80xf32>
    %c0_34 = arith.constant 0 : index
    %c0_35 = arith.constant 0 : index
    %45 = vector.load %arg8[%c0_34, %c0_35] : memref<8x1xf32, #tpu.memory_space<vmem>>, vector<8x1xf32>
    %46 = vector.broadcast %45 : vector<8x1xf32> to vector<8x80xf32>
    %47 = arith.addf %44, %46 : vector<8x80xf32>
    %cst_36 = arith.constant 0.000000e+00 : f32
    %48 = vector.broadcast %cst_36 : f32 to vector<8x80xf32>
    %49 = arith.cmpf oge, %47, %48 : vector<8x80xf32>
    %cst_37 = arith.constant 0.00999999977 : f32
    %50 = vector.broadcast %cst_37 : f32 to vector<8x80xf32>
    %51 = arith.mulf %50, %47 : vector<8x80xf32>
    %52 = arith.select %49, %47, %51 : vector<8x80xi1>, vector<8x80xf32>
    %53 = vector.broadcast %21 : vector<1x80xf32> to vector<8x80xf32>
    %54 = arith.mulf %52, %53 : vector<8x80xf32>
    %cst_38 = arith.constant 0.000000e+00 : bf16
    %55 = vector.broadcast %cst_38 : bf16 to vector<8x11xbf16>
    %c0_39 = arith.constant 0 : index
    %c0_40 = arith.constant 0 : index
    %c0_41 = arith.constant 0 : index
    %56 = vector.load %arg9[%c0_39, %c0_40, %c0_41] : memref<1x8x102xbf16, #tpu.memory_space<vmem>>, vector<1x8x11xbf16>
    %57 = vector.shape_cast %56 : vector<1x8x11xbf16> to vector<8x11xbf16>
    %58 = vector.shape_cast %55 : vector<8x11xbf16> to vector<1x8x11xbf16>
    tpu.vector_store %arg9[%c0_39, %c0_40, %c0_41], %58 {strides = array<i32>} : memref<1x8x102xbf16, #tpu.memory_space<vmem>>, vector<1x8x11xbf16>,
    %59 = arith.truncf %54 : vector<8x80xf32> to vector<8x80xbf16>
    %c0_42 = arith.constant 0 : index
    %c0_43 = arith.constant 0 : index
    %c11_44 = arith.constant 11 : index
    %60 = vector.load %arg9[%c0_42, %c0_43, %c11_44] : memref<1x8x102xbf16, #tpu.memory_space<vmem>>, vector<1x8x80xbf16>
    %61 = vector.shape_cast %60 : vector<1x8x80xbf16> to vector<8x80xbf16>
    %62 = vector.shape_cast %59 : vector<8x80xbf16> to vector<1x8x80xbf16>
    tpu.vector_store %arg9[%c0_42, %c0_43, %c11_44], %62 {strides = array<i32>} : memref<1x8x102xbf16, #tpu.memory_space<vmem>>, vector<1x8x80xbf16>,
    %c0_45 = arith.constant 0 : index
    %c0_46 = arith.constant 0 : index
    %c91 = arith.constant 91 : index
    %63 = vector.load %arg9[%c0_45, %c0_46, %c91] : memref<1x8x102xbf16, #tpu.memory_space<vmem>>, vector<1x8x11xbf16>
    %64 = vector.shape_cast %63 : vector<1x8x11xbf16> to vector<8x11xbf16>
    %65 = vector.shape_cast %55 : vector<8x11xbf16> to vector<1x8x11xbf16>
    tpu.vector_store %arg9[%c0_45, %c0_46, %c91], %65 {strides = array<i32>} : memref<1x8x102xbf16, #tpu.memory_space<vmem>>, vector<1x8x11xbf16>,
    return
  }
  func.func @transform_0(%arg0: i32) -> (i32, i32, i32) {
    %c0_i32 = arith.constant 0 : i32
    %c0_i32_0 = arith.constant 0 : i32
    %c0_i32_1 = arith.constant 0 : i32
    return %arg0, %c0_i32, %c0_i32_0 : i32, i32, i32
  }
  func.func @transform_1(%arg0: i32) -> (i32, i32, i32) {
    %c0_i32 = arith.constant 0 : i32
    %c0_i32_0 = arith.constant 0 : i32
    %c0_i32_1 = arith.constant 0 : i32
    return %arg0, %c0_i32, %c0_i32_0 : i32, i32, i32
  }
  func.func @transform_2(%arg0: i32) -> (i32, i32, i32) {
    %c0_i32 = arith.constant 0 : i32
    %c0_i32_0 = arith.constant 0 : i32
    %c0_i32_1 = arith.constant 0 : i32
    return %arg0, %c0_i32, %c0_i32_0 : i32, i32, i32
  }
  func.func @transform_3(%arg0: i32) -> (i32, i32, i32) {
    %c0_i32 = arith.constant 0 : i32
    %c0_i32_0 = arith.constant 0 : i32
    %c0_i32_1 = arith.constant 0 : i32
    return %arg0, %c0_i32, %c0_i32_0 : i32, i32, i32
  }
  func.func @transform_4(%arg0: i32) -> (i32, i32) {
    %c0_i32 = arith.constant 0 : i32
    %c0_i32_0 = arith.constant 0 : i32
    %c0_i32_1 = arith.constant 0 : i32
    return %c0_i32, %c0_i32_0 : i32, i32
  }
  func.func @transform_5(%arg0: i32) -> (i32, i32) {
    %c0_i32 = arith.constant 0 : i32
    %c0_i32_0 = arith.constant 0 : i32
    %c0_i32_1 = arith.constant 0 : i32
    return %c0_i32, %c0_i32_0 : i32, i32
  }
  func.func @transform_6(%arg0: i32) -> (i32, i32) {
    %c0_i32 = arith.constant 0 : i32
    %c0_i32_0 = arith.constant 0 : i32
    %c0_i32_1 = arith.constant 0 : i32
    return %c0_i32, %c0_i32_0 : i32, i32
  }
  func.func @transform_7(%arg0: i32) -> (i32, i32) {
    %c0_i32 = arith.constant 0 : i32
    %c0_i32_0 = arith.constant 0 : i32
    %c0_i32_1 = arith.constant 0 : i32
    return %c0_i32, %c0_i32_0 : i32, i32
  }
  func.func @transform_8(%arg0: i32) -> (i32, i32, i32) {
    %c0_i32 = arith.constant 0 : i32
    %c0_i32_0 = arith.constant 0 : i32
    %c0_i32_1 = arith.constant 0 : i32
    return %arg0, %c0_i32, %c0_i32_0 : i32, i32, i32
  }
}

</mosaic_0001>

<bundles_post_ra>
// kernel: tpu_custom_call.1
= control target key start
LH: loop header
LB: loop body
LE: loop exit
PB: predicated region body
PF: predicated region fallthrough
CT: control target
= control target key end

     0   :  { %13 = vsyncpa [#allocation3], 0  ;;  %s960_s0 = inlined_call_operand.vmem [shape: bf16[2,4,92], index: 0, kind: input, shape index: {}]   ;;  %s961_s1 = inlined_call_operand.vmem [shape: bf16[2,4,92], index: 1, kind: input, shape index: {}]   ;;  %s962_s2 = inlined_call_operand.vmem [shape: bf16[2,4,92], index: 2, kind: input, shape index: {}]   ;;  %s963_s3 = inlined_call_operand.vmem [shape: bf16[2,4,92], index: 3, kind: input, shape index: {}]   ;;  %s964_s4 = inlined_call_operand.vmem [shape: bf16[8,36], index: 4, kind: input, shape index: {}]   ;;  %s965_s5 = inlined_call_operand.vmem [shape: f32[1,80], index: 5, kind: input, shape index: {}]   ;;  %s966_s6 = inlined_call_operand.vmem [shape: f32[8,1], index: 6, kind: input, shape index: {}]   ;;  %s967_s7 = inlined_call_operand.vmem [shape: f32[8,1], index: 7, kind: input, shape index: {}]   ;;  %s968_s8 = inlined_call_operand.hbm [shape: bf16[2,8,102], index: 8, kind: output, shape index: {}]  }
   0x1   :  { %15 = vsyncpa [#allocation3 + $0x1], 0  ;;  %s828_s27 = smov 0   ;;  %s830_s28 = smov 0  }
   0x2   :  { %s832_s29 = smov 0   ;;  %s834_s30 = smov 0  }
   0x3 LB: > { %s849_s9 = sadd.s32 4294967295, %s772_s30   ;;  %s626_s10 = sadd.s32 4294967294, %s772_s30   ;;  %s772_s30 = sphi %s834_s30, %s974_s30   ;;  %s768_s29 = sphi %s832_s29, %s973_s29   ;;  %s764_s28 = sphi %s830_s28, %s972_s28   ;;  %s760_s27 = sphi %s828_s27, %s971_s27  }
   0x4   : > { %s853_s11 = sadd.s32 1, %s772_s30   ;;  %s216_s12 = sadd.s32 1, %s768_s29 }
   0x5   : > { %s213_s13 = ssub.s32 %s772_s30, %s853_s11  ;;  %p226_p0 = scmp.ne.s32.totalorder %s768_s29, %s764_s28 }
   0x6   : > { %p214_p1 = scmp.eq.s32.totalorder %s213_s13, 0  ;;  %p227_p2 = scmp.eq.s32.totalorder %s849_s9, 1 }
   0x7   : > { %p232_p3 = scmp.ne.s32.totalorder %s764_s28, %s760_s27  ;;  %p233_p4 = scmp.eq.s32.totalorder %s626_s10, 1 }
   0x8   : > { %s864_s14 = scalar_select %p214_p1, %s768_s29, %s216_s12  }
   0x9   : > { %p866_p5 = por %p227_p2, %p226_p0  ;;  %p870_p6 = por %p233_p4, %p232_p3 }
   0xa   : > { %p629_p7 = scmp.ge.s32.totalorder %s772_s30, 1  ;;  %p291_p8 = scmp.lt.s32.totalorder %s772_s30, 3 }
   0xc   : > { %p292_p9 = pnand %p629_p7, %p291_p8 }
   0xd   : > { %p336_p10 = scmp.lt.s32.totalorder (!%p292_p9), %s849_s9, 1  ;;  %v362_v0 = vlaneseq (!%p292_p9)  ;;  %v774_v1 = vmov (!%p292_p9), 1983009808   ;;  %v775_v4 = vmov (!%p292_p9), 0.0   ;;  %vm396_vm0 = vcmask (!%p292_p9), 1041408   ;;  %s777_s12 = smov (!%p292_p9), 127  }
   0xe   : > { %295 = sbr.rel (%p292_p9) target bundleno = 825 (0x339), region = 52  ;;  %v360_v2 = vunpack.c.l.s4 (!%p292_p9), %v774_v1  ;;  %647 = vmatprep.subr.bf16.mxu0 (!%p292_p9), %v775_v4  ;;  %vm776_vm1 = vmmov (!%p292_p9), 0   ;;  %s778_s13 = smov (!%p292_p9), 118   ;;  %vm400_vm2 = vcmask (!%p292_p9), 1043456   ;;  %vm403_vm3 = vcmask (!%p292_p9), 1045504   ;;  %v493_v38 = vld [vmem:[%s967_s7] sm:$0xff] (!%p292_p9) }
   0xf   : > { %v363_v3 = vshrl.u32 (!%p292_p9), %v362_v0, 7  ;;  %653 = vmatprep.mubr.msk.bf16.mxu0 (!%p292_p9), %vm776_vm1, %v775_v4  ;;  %v415_v29 = vld [vmem:[%s964_s4] sm:$0xf] (!%p292_p9)  ;;  %vm416_vm4 = vcmask (!%p292_p9), 293888   ;;  %vm471_vm5 = vcmask (!%p292_p9), 654336   ;;  %v780_v37 = vmov (!%p292_p9), 0  }
  0x10   : > { %v361_v5 = vunpack.c.0.s8 (!%p292_p9), %v360_v2  ;;  %v636_v30 = vld [vmem:[%s965_s5] ss:$0 sm:$0xff] (!%p292_p9)  ;;  %704 = vset.pattern.permute.xlu0 (!%p292_p9), %v780_v37  ;;  %705 = vset.pattern.permute.xlu1 (!%p292_p9), %v780_v37  ;;  %vm504_vm6 = vcmask (!%p292_p9), 84992   ;;  %s781_s20 = smov (!%p292_p9), 11   ;;  %vm513_vm8 = vcmask (!%p292_p9), 740440   ;;  %vm515_vm9 = vcmask (!%p292_p9), 831192  }
  0x11   : > { %v486_v45 = vld [vmem:[%s966_s6] sm:$0xff] (!%p292_p9) }
  0x12   : > { %v364_v6 = vsub.s32 (!%p292_p9), %v361_v5, %v363_v3 }
  0x15   : > { %s337_s17 = scalar_select %p336_p10, %s849_s9, 1 }
  0x17   : > { %s878_s18 = sshll.u32 %s337_s17, 1  ;;  %s779_s17 = smov 117  }
  0x18   : > { %s339_s21 = scalar_lea.vmem %s960_s0, %s878_s18  ;;  %s347_s24 = scalar_lea.vmem %s962_s2, %s878_s18 }
  0x19   : > { %v353_v7 = vld [vmem:[%s339_s21] sm:$0x3]  ;;  %s343_s10 = scalar_lea.vmem %s961_s1, %s878_s18  ;;  %s351_s21 = scalar_lea.vmem %s963_s3, %s878_s18 }
  0x1a   : > { %v373_v8 = vrot.slane %v353_v7, %v364_v6  ;;  %v706_v9 = vld [vmem:[%s347_s24] ss:$0 sps:$4 sm:$0x33]  }
  0x1b   : > { %v707_v10 = vld [vmem:[%s343_s10] ss:$0 sps:$4 sm:$0x33]   ;;  %v385_v13 = vrot.slane %v706_v9, %v364_v6 }
  0x1c   : > { %v374_v11 = vcombine.low %v373_v8, %v373_v8  ;;  %v365_v12 = vrot.slane %v707_v10, %v364_v6  ;;  %v356_v21 = vld [vmem:[%s351_s21] sm:$0x3]  ;;  %s639_s21 = sshll.u32 %s849_s9, 6  ;;  %s782_s9 = smov [#allocation2]  }
  0x1d   : > { %v386_v16 = vcombine.low %v385_v13, %v385_v13  ;;  %s918_s24 = scalar_lea.hbm %s968_s8, %s639_s21  ;;  %s714_s10 = sshll.u32 %s782_s9, 4  ;;  %s715_s10 = int_to_ptr.vmem [resolvable:$false] %s714_s10 }
  0x1e   : > { %375 = vrot.lane.b32.xlu0 %v374_v11, %s777_s12  ;;  %389 = vrot.lane.b32.xlu1 %v374_v11, %s778_s13  ;;  %v391_v14 = vcombine.low %v365_v12, %v365_v12  ;;  %v399_v15 = vsel %vm396_vm0, %v353_v7, %v365_v12 }
  0x22   : > { %387 = vrot.lane.b32.xlu0 %v385_v13, %s777_s12  ;;  %392 = vrot.lane.b32.xlu1 %v391_v14, %s778_s13  ;;  %s333_s13 = sand.u32 1, %s764_s28   ;;  %s716_s12 = scalar_lea.vmem %s715_s10, 128 }
  0x23   : > { %s518_s25 = scalar_lea.sflag [#allocation3], %s333_s13 }
  0x26   : > { %394 = vrot.lane.b32.xlu0 %v373_v8, %s779_s17  ;;  %s630_s17 = sshll.u32 %s333_s13, 2 }
  0x27   : > { %s335_s19 = scalar_lea.vmem [#allocation2], %s630_s17 }
  0x28   : > { %505 = vst.msk [vmem:[%s335_s19] sm:$0xf] %vm504_vm6, %v780_v37  ;;  %s531_s18 = sshll.u32 %s335_s19, 4  ;;  %s920_s18 = int_to_ptr.vmem [resolvable:$true] %s531_s18 }
  0x29   : > { %s710_s26 = scalar_lea.vmem %s920_s18, 64  ;;  %p717_p0 = scmp.lt.s32.totalorder %s920_s18, %s715_s10 }
  0x2a   : > { %p711_p11 = scmp.ne.s32.totalorder %s920_s18, %s710_s26  ;;  %p718_p1 = scmp.lt.s32.totalorder %s716_s12, %s710_s26 }
  0x2c   : > { %p712_p12 = pnand %p711_p11, %p866_p5  ;;  %p719_p2 = por %p718_p1, %p717_p0 }
  0x2e   : > { %p713_p13 = pneg %p712_p12 }
  0x30   : > { %p720_p3 = pnand %p719_p2, %p713_p13 }
  0x90   : > { %v376_v17 = vpop.permute.xlu0 %375  ;;  %v390_v18 = vpop.permute.xlu1 %389 }
  0x91   : > { %v402_v19 = vsel %vm400_vm2, %v399_v15, %v376_v17 }
  0x92   : > { %v405_v20 = vsel %vm403_vm3, %v402_v19, %v386_v16 }
  0x93   : > { %648 = vmatpush3.bf16.msra.mxu0 %v405_v20 }
  0x94   : > { %v388_v22 = vpop.permute.xlu0 %387  ;;  %v393_v23 = vpop.permute.xlu1 %392  ;;  %649 = vmatprep.subr.bf16.mxu0 %v775_v4 }
  0x95   : > { %v409_v24 = vsel %vm396_vm0, %v356_v21, %v388_v22 }
  0x96   : > { %v411_v25 = vsel %vm400_vm2, %v409_v24, %v390_v18 }
  0x97   : > { %v413_v26 = vsel %vm403_vm3, %v411_v25, %v393_v23 }
  0x98   : > { %650 = vmatpush3.bf16.msra.mxu0 %v413_v26  ;;  %v395_v27 = vpop.permute.xlu0 %394 }
  0x99   : > { %v421_v28 = vsel %vm396_vm0, %v395_v27, 0  ;;  %651 = vmatprep.subr.bf16.mxu0 %v775_v4 }
  0x9c   : > { %652 = vmatpush3.bf16.msra.mxu0 %v421_v28 }
  0x9f   : > { %654 = vmatmul.mubr.msk.bf16.vlgmr.msra.gmra.mrb[0].mxu0 %vm416_vm4, %v415_v29 }
 0x172   : > { %v457_v31 = vpop.f32.mrb[0].mxu0 }
 0x173   : > { %v470_v32 = vmul.f32 %v636_v30, %v457_v31  ;;  %v655_v33 = vpop.f32.mrb[1].mxu0 }
 0x174   : > { %v460_v34 = vpop.f32.mrb[2].mxu0 }
 0x175   : > { %v656_v35 = vpop.f32.mrb[3].mxu0  ;;  %v472_v36 = vsel %vm471_vm5, %v470_v32, 0.0 }
 0x176   : > { %473 = vadd.xlane.f32.xlu1 %v472_v36 }
 0x187   : > { %496 = vperm.xlu1 %705, %v493_v38  }
 0x203   : > { %v474_v39 = vpop.xlane.xlu1 %473 }
 0x204   : > { %v475_v40 = vmul.f32 0.015625, %v474_v39 }
 0x206   : > { %v476_v41 = vsub.f32 %v457_v31, %v475_v40 }
 0x207   : > { %v497_v52 = vpop.permute.xlu1 %496 }
 0x208   : > { %v477_v42 = vmul.f32 %v476_v41, %v476_v41 }
 0x20a   : > { %v478_v43 = vmul.f32 %v636_v30, %v477_v42 }
 0x20c   : > { %v479_v44 = vsel %vm471_vm5, %v478_v43, 0.0 }
 0x20d   : > { %480 = vadd.xlane.f32.xlu0 %v479_v44 }
 0x223   : > { %489 = vperm.xlu0 %704, %v486_v45  }
 0x29a   : > { %v481_v46 = vpop.xlane.xlu0 %480 }
 0x29b   : > { %v482_v47 = vmul.f32 0.015625, %v481_v46 }
 0x29d   : > { %v483_v48 = vadd.f32 1e-05, %v482_v47 }
 0x29f   : > { %708 = vrsqrt.f32 %v483_v48 }
 0x2a2   : > { %v490_v50 = vpop.permute.xlu0 %489 }
 0x2a9   : > { %v709_v49 = vpop.eup %708 }
 0x2aa   : > { %v485_v51 = vmul.f32 %v709_v49, %v476_v41 }
 0x2ac   : > { %v492_v53 = vmul.f32 %v490_v50, %v485_v51 }
 0x2ae   : > { %v499_v54 = vadd.f32 %v497_v52, %v492_v53 }
 0x2b0   : > { %vm500_vm7 = vcmp.ge.f32.partialorder %v499_v54, 0.0  ;;  %v501_v55 = vmul.f32 0.01, %v499_v54 }
 0x2b2   : > { %v502_v56 = vsel %vm500_vm7, %v499_v54, %v501_v55 }
 0x2b3   : > { %v503_v57 = vmul.f32 %v636_v30, %v502_v56 }
 0x2b5   : > { %v642_v58 = vpack.c.bf16 %v503_v57, %v503_v57 }
 0x2b7   : > { %510 = vrot.lane.b32.xlu1 %v642_v58, %s781_s20 }
 0x329   : > { %v511_v59 = vpop.permute.xlu1 %510 }
 0x32a   : > { %514 = vst.msk [vmem:[%s335_s19] sm:$0xf] %vm513_vm8, %v511_v59 }
 0x32b   : > { %516 = vst.msk [vmem:[%s335_s19] sm:$0xf] %vm515_vm9, %v780_v37 }
 0x32c   : > { %723 = shalt.err (!%p720_p3)
}
 0x32d   : > { %s724_s13 = scalar_lea.hbm %s918_s24, 64  ;;  %s728_s20 = scalar_lea.hbm %s968_s8, 128 }
 0x32e   : > { %p725_p4 = scmp.ne.s32.totalorder %s918_s24, %s724_s13  ;;  %p729_p9 = scmp.lt.u32.totalorder %s918_s24, %s968_s8 }
 0x32f   : > { %p730_p10 = scmp.lt.u32.totalorder %s728_s20, %s724_s13  ;;  %p732_p12 = scmp.lt.u32.totalorder %s724_s13, %s918_s24 }
 0x330   : > { %p726_p7 = pnand %p725_p4, %p866_p5 }
 0x331   : > { %p731_p11 = por %p730_p10, %p729_p9 }
 0x332   : > { %p727_p8 = pneg %p726_p7 }
 0x333   : > { %p733_p13 = por %p732_p12, %p731_p11 }
 0x335   : > { %p734_p0 = pnand %p733_p13, %p727_p8 }
 0x337   : > { %737 = shalt.err (!%p734_p0)
}
 0x338   : > { %657 = dma.vmem_to_hbm [thread:$0]  (%p866_p5), %s920_s18, 64, %s918_s24, %s518_s25  }
 0x339 PF: > { %p663_p1 = scmp.ge.s32.totalorder %s772_s30, 2  ;;  %s543_s23 = sand.u32 1, %s760_s27  }
 0x33a   : > { %s544_s26 = scalar_lea.sflag [#allocation3], %s543_s23 }
 0x33b   : > { %p660_p2 = pnand %p663_p1, %p870_p6 }
 0x33d   : > { %755 = dma.done.wait (!%p660_p2), %s544_s26, 64  }
 0x33e   : > { %757 = vsyncadd (!%p660_p2), %s544_s26, 4294967232  ;;  %p18_p3 = scmp.ge.s32.totalorder %s853_s11, 4   ;;  %s971_s27 = smov %s764_s28 }
 0x33f   : > { %s972_s28 = smov %s768_s29  ;;  %s973_s29 = smov %s864_s14 }
 0x340   : > { %s974_s30 = smov %s853_s11  ;;  %20 = sbr.rel (!%p18_p3) target bundleno = 3 (0x3), region = 96 }
 0x347   :  { %549 = vsyncpa [#allocation3], 1 }
 0x348   :  { %551 = vsyncpa [#allocation3 + $0x1], 1 }

</bundles_post_ra>
